<compile_context>
chip_gen: v7x
topology: tpu7x:2x2x1
jax: 0.10.0
libtpu: 0.0.40
codegen_flags: <defaults>
</compile_context>

<pallas_src>
import functools
import math

import jax
import jax.numpy as jnp
from jax import lax
from jax.experimental import pallas as pl
from jax.experimental.pallas import tpu as pltpu


_NEG = -1e30          # large finite negative: avoids inf-inf -> NaN in online softmax


# --------------------------- feature / hardware probes ---------------------------

_BUFFERED_OK = None


def _buffered_single_ok():
    """True iff this jax/Mosaic build supports pipeline_mode=pl.Buffered(1)
    (single-buffering) on input BlockSpecs; verified numerically on a tiny kernel
    with both a grid-invariant and a changing single-buffered input."""
    global _BUFFERED_OK
    if _BUFFERED_OK is not None:
        return _BUFFERED_OK
    try:
        def probe_kernel(w_ref, x_ref, o_ref):
            o_ref[...] = x_ref[...] + w_ref[...]

        x = jnp.arange(4 * 8 * 128, dtype=jnp.float32).reshape(4 * 8, 128)
        w = jnp.full((8, 128), 0.5, jnp.float32)
        out = pl.pallas_call(
            probe_kernel,
            out_shape=jax.ShapeDtypeStruct(x.shape, jnp.float32),
            grid=(4,),
            in_specs=[
                pl.BlockSpec((8, 128), lambda i: (0, 0),
                             pipeline_mode=pl.Buffered(1)),   # grid-invariant input
                pl.BlockSpec((8, 128), lambda i: (i, 0),
                             pipeline_mode=pl.Buffered(1)),   # changing input
            ],
            out_specs=pl.BlockSpec((8, 128), lambda i: (i, 0)),
        )(w, x)
        out = jax.block_until_ready(out)
        _BUFFERED_OK = bool(jnp.allclose(out, x + 0.5))
    except Exception:
        _BUFFERED_OK = False
    return _BUFFERED_OK


def _vmem_limit_bytes():
    """Generation-aware scoped-VMEM limit: ~3/4 of physical VMEM, capped at 100 MiB
    (-> ~96 MiB on v5e/v6e's 128 MiB, ~48 MiB on v7x's 64 MiB)."""
    try:
        cap = int(pltpu.get_tpu_info().vmem_capacity_bytes)
        return min((cap * 3) // 4, 100 * 1024 * 1024)
    except Exception:
        return 48 * 1024 * 1024


# ----------------------------- in-kernel helpers -----------------------------

def _layernorm(v, g, b, eps=1e-5):
    mu = jnp.mean(v, axis=-1, keepdims=True)
    var = jnp.mean((v - mu) ** 2, axis=-1, keepdims=True)
    return (v - mu) * lax.rsqrt(var + eps) * g + b


def _gelu_tanh(x):
    # matches torch.nn.GELU(approximate='tanh')
    c = math.sqrt(2.0 / math.pi)
    return 0.5 * x * (1.0 + jnp.tanh(c * (x + 0.044715 * x * x * x)))


# ------------------ kernel 1: LN1 + QKV projection (head-major) --------------

def _qkv_kernel(n_head, x_ref, g_ref, b_ref, w_ref, bias_ref, q_ref, k_ref, v_ref):
    x = x_ref[0].astype(jnp.float32)                      # (TS, C)
    C = x.shape[1]
    D = C // n_head

    h = _layernorm(x, g_ref[...].astype(jnp.float32), b_ref[...].astype(jnp.float32))
    qkv = jnp.dot(h.astype(w_ref.dtype), w_ref[...],
                  preferred_element_type=jnp.float32)
    qkv = qkv + bias_ref[...].astype(jnp.float32)         # (TS, 3C)

    # 1/sqrt(D) attention scale applied once here (VPU mul, hidden under the MXU);
    # no wrapper-side weight rewrite in HBM.
    scale = 1.0 / math.sqrt(D)
    qs = qkv[:, 0 * C:1 * C] * scale
    ks = qkv[:, 1 * C:2 * C]
    vs = qkv[:, 2 * C:3 * C]

    # store-side head split only (no per-head compute loop / concat in the attn kernel)
    # TODO(synk): for D < 128 these D-wide stores are masked half-lane ops; pack two
    # heads per 128-lane group ((B, H/2, T, 2D)) to make the K/V layout lane-dense.
    for hh in range(n_head):
        q_ref[0, hh] = qs[:, hh * D:(hh + 1) * D].astype(q_ref.dtype)
        k_ref[0, hh] = ks[:, hh * D:(hh + 1) * D].astype(k_ref.dtype)
        v_ref[0, hh] = vs[:, hh * D:(hh + 1) * D].astype(v_ref.dtype)


# ---- kernel 2: flash attention + c_proj + residual + LN2 + chunked MLP ------

def _attn_mlp_kernel(n_head, tile_k, hid_tile, neg,
                     x_ref, q_ref, k_ref, v_ref,
                     wpr_ref, bpr_ref, ln2g_ref, ln2b_ref,
                     wfc_ref, bfc_ref, wp2_ref, bp2_ref,
                     o_ref):
    qi = pl.program_id(1)
    x = x_ref[0].astype(jnp.float32)                      # (TQ, C)
    TQ, C = x.shape
    H = n_head
    D = C // H
    TK = tile_k                                           # == TQ (square tiles)

    q = q_ref[0]                                          # (H, TQ, D), pre-scaled

    # causal mask for the diagonal tile only (global k <= global q  <=>  kl <= ql)
    ql = lax.broadcasted_iota(jnp.int32, (TQ, TK), 0)
    kl = lax.broadcasted_iota(jnp.int32, (TQ, TK), 1)
    diag_mask = kl <= ql

    def attend(j, carry, masked):
        m, l, acc = carry
        off = pl.multiple_of(j * TK, TK)
        k_t = k_ref[0, :, pl.ds(off, TK), :]              # (H, TK, D)
        v_t = v_ref[0, :, pl.ds(off, TK), :]
        s = jnp.einsum('hqd,hkd->hqk', q, k_t, preferred_element_type=jnp.float32)
        if masked:
            s = jnp.where(diag_mask, s, neg)
        m_new = jnp.maximum(m, jnp.max(s, axis=-1, keepdims=True))
        alpha = jnp.exp(m - m_new)
        p = jnp.exp(s - m_new)
        l_new = alpha * l + jnp.sum(p, axis=-1, keepdims=True)
        acc_new = alpha * acc + jnp.einsum('hqk,hkd->hqd', p.astype(v_t.dtype), v_t,
                                           preferred_element_type=jnp.float32)
        return m_new, l_new, acc_new

    m0 = jnp.full((H, TQ, 1), neg, jnp.float32)
    l0 = jnp.zeros((H, TQ, 1), jnp.float32)
    a0 = jnp.zeros((H, TQ, D), jnp.float32)
    # stream only the KV tiles strictly below the diagonal (causal skip), unmasked
    carry = lax.fori_loop(0, qi, lambda j, c: attend(j, c, False), (m0, l0, a0))
    # diagonal tile with the causal mask
    _, l, acc = attend(qi, carry, True)

    o = acc * pl.reciprocal(l, approx=True)               # (H, TQ, D)

    # head-batched c_proj: per-head (TQ,D)@(D,C) dots accumulated in f32 — feeds the
    # MXU directly, no cross-lane head concat / XLU relayout.
    attn = jnp.zeros((TQ, C), jnp.float32)
    for hh in range(H):
        attn = attn + jnp.dot(o[hh].astype(wpr_ref.dtype), wpr_ref[hh],
                              preferred_element_type=jnp.float32)
    attn = attn + bpr_ref[...].astype(jnp.float32)
    x1 = x + attn

    # ---------------- MLP with hidden-dim chunking ----------------
    h2 = _layernorm(x1, ln2g_ref[...].astype(jnp.float32),
                    ln2b_ref[...].astype(jnp.float32))
    h2c = h2.astype(wfc_ref.dtype)
    HID = wfc_ref.shape[1]
    TN = hid_tile

    def mlp_chunk(j, acc2):
        off = pl.multiple_of(j * TN, TN)
        w1 = wfc_ref[:, pl.ds(off, TN)]                   # (C, TN)
        b1 = bfc_ref[:, pl.ds(off, TN)].astype(jnp.float32)
        f = jnp.dot(h2c, w1, preferred_element_type=jnp.float32) + b1
        f = _gelu_tanh(f)
        w2 = wp2_ref[pl.ds(off, TN), :]                   # (TN, C)
        return acc2 + jnp.dot(f.astype(w2.dtype), w2,
                              preferred_element_type=jnp.float32)

    # unrolled: GELU of chunk j overlaps the matmuls of chunk j+1
    mlp = lax.fori_loop(0, HID // TN, mlp_chunk,
                        jnp.zeros((TQ, C), jnp.float32), unroll=True)
    mlp = mlp + bp2_ref[...].astype(jnp.float32)

    o_ref[0] = (x1 + mlp).astype(o_ref.dtype)


# --------------------------------- wrapper -----------------------------------

def _pick_tile(total, target, multiple):
    """Largest divisor of `total` that is <= target and a multiple of `multiple`
    (falls back to `total`, i.e. no tiling)."""
    if total <= target:
        return total
    for cand in range(target, 0, -1):
        if total % cand == 0 and cand % multiple == 0:
            return cand
    return total


def gpt_block(x, params, n_head, *, q_tile=256, seq_tile=256, hid_tile=512):
    B, T, C = x.shape
    H = n_head
    assert C % H == 0
    D = C // H
    HID = params['w_fc'].shape[1]

    mult = 16 if jnp.dtype(x.dtype).itemsize == 2 else 8   # bf16 sublane packing is 16
    ts = _pick_tile(T, seq_tile, mult)     # kernel-1 sequence tile
    tq = _pick_tile(T, q_tile, mult)       # kernel-2 query / KV tile (square)
    tn = _pick_tile(HID, hid_tile, 128)    # MLP hidden chunk
    assert T % ts == 0 and T % tq == 0 and HID % tn == 0

    # (H, D, C) view of c_proj for the head-batched contraction (metadata-only reshape;
    # no HBM weight rewrite in the wrapper).
    w_proj_h = params['w_proj'].reshape(H, D, C)

    buffered = _buffered_single_ok()

    def spec(shape, index_map, *, single=False):
        if single and buffered:
            # single-buffer resident weights / per-batch K-V: no pipelining benefit,
            # halves their VMEM footprint.
            return pl.BlockSpec(shape, index_map, pipeline_mode=pl.Buffered(1))
        return pl.BlockSpec(shape, index_map)

    def whole(a):
        return spec(a.shape, lambda b, i, nd=a.ndim: (0,) * nd, single=True)

    cparams = pltpu.CompilerParams(
        dimension_semantics=("parallel", "parallel"),
        vmem_limit_bytes=_vmem_limit_bytes())

    # ------------- kernel 1: LN1 + QKV, head-major (B, H, T, D) outputs -------------
    q, k, v = pl.pallas_call(
        functools.partial(_qkv_kernel, H),
        out_shape=tuple(jax.ShapeDtypeStruct((B, H, T, D), x.dtype) for _ in range(3)),
        grid=(B, T // ts),
        in_specs=[spec((1, ts, C), lambda b, i: (b, i, 0)),
                  whole(params['ln1_g']), whole(params['ln1_b']),
                  whole(params['w_qkv']), whole(params['b_qkv'])],
        out_specs=tuple(pl.BlockSpec((1, H, ts, D), lambda b, i: (b, 0, i, 0))
                        for _ in range(3)),
        compiler_params=cparams,
    )(x, params['ln1_g'], params['ln1_b'], params['w_qkv'], params['b_qkv'])

    # --- kernel 2: flash attention + c_proj + residual + LN2 + chunked MLP + res ---
    ordered = [w_proj_h, params['b_proj'],
               params['ln2_g'], params['ln2_b'],
               params['w_fc'], params['b_fc'],
               params['w_p2'], params['b_p2']]
    # TODO(synk): for production T on v7x (64 MiB VMEM) stream K/V TK-tiles from HBM
    # with a manual double-buffered make_async_copy (memory_space=pl.ANY), decouple
    # TK from TQ, and stream the MLP weight chunks the same way.
    # TODO(synk): causal skip makes late q tiles ~3x heavier; on v7x interleave the
    # q-tile index_map (pair tile i with N-1-i) to balance the two TensorCores.
    return pl.pallas_call(
        functools.partial(_attn_mlp_kernel, H, tq, tn, _NEG),
        out_shape=jax.ShapeDtypeStruct((B, T, C), x.dtype),
        grid=(B, T // tq),
        in_specs=[spec((1, tq, C), lambda b, i: (b, i, 0)),
                  spec((1, H, tq, D), lambda b, i: (b, 0, i, 0)),
                  spec((1, H, T, D), lambda b, i: (b, 0, 0, 0), single=True),
                  spec((1, H, T, D), lambda b, i: (b, 0, 0, 0), single=True)]
                 + [whole(a) for a in ordered],
        out_specs=pl.BlockSpec((1, tq, C), lambda b, i: (b, i, 0)),
        compiler_params=cparams,
    )(x, q, k, v, *ordered)


# ------------------------------ pure-JAX reference ---------------------------

def gpt_block_ref(x, params, n_head):
    B, T, C = x.shape
    D = C // n_head

    def ln(v, g, b):
        mu = v.mean(-1, keepdims=True)
        var = ((v - mu) ** 2).mean(-1, keepdims=True)
        return (v - mu) / jnp.sqrt(var + 1e-5) * g[0] + b[0]

    h = ln(x, params['ln1_g'], params['ln1_b'])
    qkv = h @ params['w_qkv'] + params['b_qkv'][0]
    q, k, v = jnp.split(qkv, 3, axis=-1)
    q = q.reshape(B, T, n_head, D).transpose(0, 2, 1, 3)
    k = k.reshape(B, T, n_head, D).transpose(0, 2, 1, 3)
    v = v.reshape(B, T, n_head, D).transpose(0, 2, 1, 3)
    s = jnp.einsum('bhqd,bhkd->bhqk', q, k) / math.sqrt(D)
    mask = jnp.tril(jnp.ones((T, T), bool))
    s = jnp.where(mask, s, -jnp.inf)
    p = jax.nn.softmax(s, axis=-1)
    y = jnp.einsum('bhqk,bhkd->bhqd', p, v).transpose(0, 2, 1, 3).reshape(B, T, C)
    x1 = x + (y @ params['w_proj'] + params['b_proj'][0])

    h2 = ln(x1, params['ln2_g'], params['ln2_b'])
    f = h2 @ params['w_fc'] + params['b_fc'][0]
    c = math.sqrt(2.0 / math.pi)
    f = 0.5 * f * (1.0 + jnp.tanh(c * (f + 0.044715 * f ** 3)))
    return x1 + (f @ params['w_p2'] + params['b_p2'][0])


# ---------------------------------- main -------------------------------------

if __name__ == "__main__":
    B, T, C, n_head = 2, 16, 32, 4

    key = jax.random.PRNGKey(0)
    ks = jax.random.split(key, 9)

    def init(k, shape, std=0.02):
        return (std * jax.random.normal(k, shape)).astype(jnp.float32)

    params = {
        'ln1_g': jnp.ones((1, C), jnp.float32),
        'ln1_b': jnp.zeros((1, C), jnp.float32),
        'w_qkv': init(ks[0], (C, 3 * C)),
        'b_qkv': init(ks[1], (1, 3 * C)),
        'w_proj': init(ks[2], (C, C)),
        'b_proj': init(ks[3], (1, C)),
        'ln2_g': jnp.ones((1, C), jnp.float32),
        'ln2_b': jnp.zeros((1, C), jnp.float32),
        'w_fc': init(ks[4], (C, 4 * C)),
        'b_fc': init(ks[5], (1, 4 * C)),
        'w_p2': init(ks[6], (4 * C, C)),
        'b_p2': init(ks[7], (1, C)),
    }

    x = jax.random.normal(ks[8], (B, T, C), jnp.float32)

    # small tiles so the multi-KV-tile flash path (causal skip + online softmax)
    # is exercised even at this tiny demo size.
    out = gpt_block(x, params, n_head, q_tile=8, seq_tile=8, hid_tile=512)
    out = jax.block_until_ready(out)

    ref = gpt_block_ref(x, params, n_head)
    assert out.shape == (B, T, C)
    assert jnp.allclose(out, ref, rtol=2e-2, atol=2e-2), "mismatch vs. JAX reference"

    print("KERNEL_OK")
</pallas_src>

<mosaic_0001>
module attributes {stable_mosaic.version = 11 : i64} {
  func.func @probe_kernel(%arg0: i32, %arg1: memref<8x128xf32, #tpu.memory_space<vmem>>, %arg2: memref<8x128xf32, #tpu.memory_space<vmem>>, %arg3: memref<8x128xf32, #tpu.memory_space<vmem>>) attributes {dimension_semantics = [#tpu.dimension_semantics<arbitrary>], iteration_bounds = array<i64: 4>, scalar_prefetch = 0 : i64, scratch_operands = 0 : i64, tpu.core_type = #tpu.core_type<tc>, window_params = [{pipeline_mode = #tpu.pipeline_mode<synchronous>, transform_indices = @transform_0, window_bounds = array<i64: 8, 128>}, {pipeline_mode = #tpu.pipeline_mode<synchronous>, transform_indices = @transform_1, window_bounds = array<i64: 8, 128>}, {transform_indices = @transform_2, window_bounds = array<i64: 8, 128>}]} {
    %c0 = arith.constant 0 : index
    %c0_0 = arith.constant 0 : index
    %0 = vector.load %arg2[%c0, %c0_0] : memref<8x128xf32, #tpu.memory_space<vmem>>, vector<8x128xf32>
    %c0_1 = arith.constant 0 : index
    %c0_2 = arith.constant 0 : index
    %1 = vector.load %arg1[%c0_1, %c0_2] : memref<8x128xf32, #tpu.memory_space<vmem>>, vector<8x128xf32>
    %2 = arith.addf %0, %1 : vector<8x128xf32>
    %c0_3 = arith.constant 0 : index
    %c0_4 = arith.constant 0 : index
    %3 = vector.load %arg3[%c0_3, %c0_4] : memref<8x128xf32, #tpu.memory_space<vmem>>, vector<8x128xf32>
    tpu.vector_store %arg3[%c0_3, %c0_4], %2 {strides = array<i32>} : memref<8x128xf32, #tpu.memory_space<vmem>>, vector<8x128xf32>,
    return
  }
  func.func @transform_0(%arg0: i32) -> (i32, i32) {
    %c0_i32 = arith.constant 0 : i32
    %c0_i32_0 = arith.constant 0 : i32
    %c0_i32_1 = arith.constant 0 : i32
    return %c0_i32, %c0_i32_0 : i32, i32
  }
  func.func @transform_1(%arg0: i32) -> (i32, i32) {
    %c0_i32 = arith.constant 0 : i32
    %c0_i32_0 = arith.constant 0 : i32
    return %arg0, %c0_i32 : i32, i32
  }
  func.func @transform_2(%arg0: i32) -> (i32, i32) {
    %c0_i32 = arith.constant 0 : i32
    %c0_i32_0 = arith.constant 0 : i32
    return %arg0, %c0_i32 : i32, i32
  }
}

module attributes {stable_mosaic.version = 11 : i64} {
  func.func @_qkv_kernel(%arg0: i32, %arg1: i32, %arg2: memref<1x8x32xf32, #tpu.memory_space<vmem>>, %arg3: memref<1x32xf32, #tpu.memory_space<vmem>>, %arg4: memref<1x32xf32, #tpu.memory_space<vmem>>, %arg5: memref<32x96xf32, #tpu.memory_space<vmem>>, %arg6: memref<1x96xf32, #tpu.memory_space<vmem>>, %arg7: memref<1x4x8x8xf32, #tpu.memory_space<vmem>>, %arg8: memref<1x4x8x8xf32, #tpu.memory_space<vmem>>, %arg9: memref<1x4x8x8xf32, #tpu.memory_space<vmem>>) attributes {dimension_semantics = [#tpu.dimension_semantics<parallel>, #tpu.dimension_semantics<parallel>], iteration_bounds = array<i64: 2, 2>, scalar_prefetch = 0 : i64, scratch_operands = 0 : i64, tpu.core_type = #tpu.core_type<tc>, window_params = [{transform_indices = @transform_0, window_bounds = array<i64: 1, 8, 32>}, {pipeline_mode = #tpu.pipeline_mode<synchronous>, transform_indices = @transform_1, window_bounds = array<i64: 1, 32>}, {pipeline_mode = #tpu.pipeline_mode<synchronous>, transform_indices = @transform_2, window_bounds = array<i64: 1, 32>}, {pipeline_mode = #tpu.pipeline_mode<synchronous>, transform_indices = @transform_3, window_bounds = array<i64: 32, 96>}, {pipeline_mode = #tpu.pipeline_mode<synchronous>, transform_indices = @transform_4, window_bounds = array<i64: 1, 96>}, {transform_indices = @transform_5, window_bounds = array<i64: 1, 4, 8, 8>}, {transform_indices = @transform_6, window_bounds = array<i64: 1, 4, 8, 8>}, {transform_indices = @transform_7, window_bounds = array<i64: 1, 4, 8, 8>}]} {
    %c0 = arith.constant 0 : index
    %c0_0 = arith.constant 0 : index
    %c0_1 = arith.constant 0 : index
    %0 = vector.load %arg2[%c0, %c0_0, %c0_1] : memref<1x8x32xf32, #tpu.memory_space<vmem>>, vector<1x8x32xf32>
    %1 = vector.shape_cast %0 : vector<1x8x32xf32> to vector<8x32xf32>
    %c0_2 = arith.constant 0 : index
    %c0_3 = arith.constant 0 : index
    %2 = vector.load %arg3[%c0_2, %c0_3] : memref<1x32xf32, #tpu.memory_space<vmem>>, vector<1x32xf32>
    %c0_4 = arith.constant 0 : index
    %c0_5 = arith.constant 0 : index
    %3 = vector.load %arg4[%c0_4, %c0_5] : memref<1x32xf32, #tpu.memory_space<vmem>>, vector<1x32xf32>
    %cst = arith.constant dense<0.000000e+00> : vector<8xf32>
    %4 = vector.multi_reduction <add>, %1, %cst [1] : vector<8x32xf32> to vector<8xf32>
    %5 = vector.shape_cast %4 : vector<8xf32> to vector<8x1xf32>
    %cst_6 = arith.constant 3.200000e+01 : f32
    %6 = vector.broadcast %cst_6 : f32 to vector<8x1xf32>
    %7 = arith.divf %5, %6 : vector<8x1xf32>
    %8 = vector.broadcast %7 : vector<8x1xf32> to vector<8x32xf32>
    %9 = arith.subf %1, %8 : vector<8x32xf32>
    %10 = arith.mulf %9, %9 : vector<8x32xf32>
    %cst_7 = arith.constant dense<0.000000e+00> : vector<8xf32>
    %11 = vector.multi_reduction <add>, %10, %cst_7 [1] : vector<8x32xf32> to vector<8xf32>
    %12 = vector.shape_cast %11 : vector<8xf32> to vector<8x1xf32>
    %cst_8 = arith.constant 3.200000e+01 : f32
    %13 = vector.broadcast %cst_8 : f32 to vector<8x1xf32>
    %14 = arith.divf %12, %13 : vector<8x1xf32>
    %15 = vector.broadcast %7 : vector<8x1xf32> to vector<8x32xf32>
    %16 = arith.subf %1, %15 : vector<8x32xf32>
    %cst_9 = arith.constant 9.99999974E-6 : f32
    %17 = vector.broadcast %cst_9 : f32 to vector<8x1xf32>
    %18 = arith.addf %14, %17 : vector<8x1xf32>
    %19 = math.rsqrt %18 : vector<8x1xf32>
    %20 = vector.broadcast %19 : vector<8x1xf32> to vector<8x32xf32>
    %21 = arith.mulf %16, %20 : vector<8x32xf32>
    %22 = vector.broadcast %2 : vector<1x32xf32> to vector<8x32xf32>
    %23 = arith.mulf %21, %22 : vector<8x32xf32>
    %24 = vector.broadcast %3 : vector<1x32xf32> to vector<8x32xf32>
    %25 = arith.addf %23, %24 : vector<8x32xf32>
    %c0_10 = arith.constant 0 : index
    %c0_11 = arith.constant 0 : index
    %26 = vector.load %arg5[%c0_10, %c0_11] : memref<32x96xf32, #tpu.memory_space<vmem>>, vector<32x96xf32>
    %cst_12 = arith.constant dense<0.000000e+00> : vector<8x96xf32>
    %27 = tpu.matmul %25, %26, %cst_12 {dimension_numbers = #tpu.dot_dimension_numbers<[1], [0], [0], [1], [0, 0, 1, 1], [], []>} : vector<8x32xf32>, vector<32x96xf32>, vector<8x96xf32> -> vector<8x96xf32>
    %c0_13 = arith.constant 0 : index
    %c0_14 = arith.constant 0 : index
    %28 = vector.load %arg6[%c0_13, %c0_14] : memref<1x96xf32, #tpu.memory_space<vmem>>, vector<1x96xf32>
    %29 = vector.broadcast %28 : vector<1x96xf32> to vector<8x96xf32>
    %30 = arith.addf %27, %29 : vector<8x96xf32>
    %31 = vector.extract_strided_slice %30 {offsets = [0, 0], sizes = [8, 32], strides = [1, 1]} : vector<8x96xf32> to vector<8x32xf32>
    %cst_15 = arith.constant 0.353553385 : f32
    %32 = vector.broadcast %cst_15 : f32 to vector<8x32xf32>
    %33 = arith.mulf %31, %32 : vector<8x32xf32>
    %34 = vector.extract_strided_slice %30 {offsets = [0, 32], sizes = [8, 32], strides = [1, 1]} : vector<8x96xf32> to vector<8x32xf32>
    %35 = vector.extract_strided_slice %30 {offsets = [0, 64], sizes = [8, 32], strides = [1, 1]} : vector<8x96xf32> to vector<8x32xf32>
    %36 = vector.extract_strided_slice %33 {offsets = [0, 0], sizes = [8, 8], strides = [1, 1]} : vector<8x32xf32> to vector<8x8xf32>
    %c0_16 = arith.constant 0 : index
    %c0_17 = arith.constant 0 : index
    %c0_18 = arith.constant 0 : index
    %c0_19 = arith.constant 0 : index
    %37 = vector.load %arg7[%c0_16, %c0_17, %c0_18, %c0_19] : memref<1x4x8x8xf32, #tpu.memory_space<vmem>>, vector<1x1x8x8xf32>
    %38 = vector.shape_cast %37 : vector<1x1x8x8xf32> to vector<8x8xf32>
    %39 = vector.shape_cast %36 : vector<8x8xf32> to vector<1x1x8x8xf32>
    tpu.vector_store %arg7[%c0_16, %c0_17, %c0_18, %c0_19], %39 {strides = array<i32>} : memref<1x4x8x8xf32, #tpu.memory_space<vmem>>, vector<1x1x8x8xf32>,
    %40 = vector.extract_strided_slice %34 {offsets = [0, 0], sizes = [8, 8], strides = [1, 1]} : vector<8x32xf32> to vector<8x8xf32>
    %c0_20 = arith.constant 0 : index
    %c0_21 = arith.constant 0 : index
    %c0_22 = arith.constant 0 : index
    %c0_23 = arith.constant 0 : index
    %41 = vector.load %arg8[%c0_20, %c0_21, %c0_22, %c0_23] : memref<1x4x8x8xf32, #tpu.memory_space<vmem>>, vector<1x1x8x8xf32>
    %42 = vector.shape_cast %41 : vector<1x1x8x8xf32> to vector<8x8xf32>
    %43 = vector.shape_cast %40 : vector<8x8xf32> to vector<1x1x8x8xf32>
    tpu.vector_store %arg8[%c0_20, %c0_21, %c0_22, %c0_23], %43 {strides = array<i32>} : memref<1x4x8x8xf32, #tpu.memory_space<vmem>>, vector<1x1x8x8xf32>,
    %44 = vector.extract_strided_slice %35 {offsets = [0, 0], sizes = [8, 8], strides = [1, 1]} : vector<8x32xf32> to vector<8x8xf32>
    %c0_24 = arith.constant 0 : index
    %c0_25 = arith.constant 0 : index
    %c0_26 = arith.constant 0 : index
    %c0_27 = arith.constant 0 : index
    %45 = vector.load %arg9[%c0_24, %c0_25, %c0_26, %c0_27] : memref<1x4x8x8xf32, #tpu.memory_space<vmem>>, vector<1x1x8x8xf32>
    %46 = vector.shape_cast %45 : vector<1x1x8x8xf32> to vector<8x8xf32>
    %47 = vector.shape_cast %44 : vector<8x8xf32> to vector<1x1x8x8xf32>
    tpu.vector_store %arg9[%c0_24, %c0_25, %c0_26, %c0_27], %47 {strides = array<i32>} : memref<1x4x8x8xf32, #tpu.memory_space<vmem>>, vector<1x1x8x8xf32>,
    %48 = vector.extract_strided_slice %33 {offsets = [0, 8], sizes = [8, 8], strides = [1, 1]} : vector<8x32xf32> to vector<8x8xf32>
    %c0_28 = arith.constant 0 : index
    %c1 = arith.constant 1 : index
    %c0_29 = arith.constant 0 : index
    %c0_30 = arith.constant 0 : index
    %49 = vector.load %arg7[%c0_28, %c1, %c0_29, %c0_30] : memref<1x4x8x8xf32, #tpu.memory_space<vmem>>, vector<1x1x8x8xf32>
    %50 = vector.shape_cast %49 : vector<1x1x8x8xf32> to vector<8x8xf32>
    %51 = vector.shape_cast %48 : vector<8x8xf32> to vector<1x1x8x8xf32>
    tpu.vector_store %arg7[%c0_28, %c1, %c0_29, %c0_30], %51 {strides = array<i32>} : memref<1x4x8x8xf32, #tpu.memory_space<vmem>>, vector<1x1x8x8xf32>,
    %52 = vector.extract_strided_slice %34 {offsets = [0, 8], sizes = [8, 8], strides = [1, 1]} : vector<8x32xf32> to vector<8x8xf32>
    %c0_31 = arith.constant 0 : index
    %c1_32 = arith.constant 1 : index
    %c0_33 = arith.constant 0 : index
    %c0_34 = arith.constant 0 : index
    %53 = vector.load %arg8[%c0_31, %c1_32, %c0_33, %c0_34] : memref<1x4x8x8xf32, #tpu.memory_space<vmem>>, vector<1x1x8x8xf32>
    %54 = vector.shape_cast %53 : vector<1x1x8x8xf32> to vector<8x8xf32>
    %55 = vector.shape_cast %52 : vector<8x8xf32> to vector<1x1x8x8xf32>
    tpu.vector_store %arg8[%c0_31, %c1_32, %c0_33, %c0_34], %55 {strides = array<i32>} : memref<1x4x8x8xf32, #tpu.memory_space<vmem>>, vector<1x1x8x8xf32>,
    %56 = vector.extract_strided_slice %35 {offsets = [0, 8], sizes = [8, 8], strides = [1, 1]} : vector<8x32xf32> to vector<8x8xf32>
    %c0_35 = arith.constant 0 : index
    %c1_36 = arith.constant 1 : index
    %c0_37 = arith.constant 0 : index
    %c0_38 = arith.constant 0 : index
    %57 = vector.load %arg9[%c0_35, %c1_36, %c0_37, %c0_38] : memref<1x4x8x8xf32, #tpu.memory_space<vmem>>, vector<1x1x8x8xf32>
    %58 = vector.shape_cast %57 : vector<1x1x8x8xf32> to vector<8x8xf32>
    %59 = vector.shape_cast %56 : vector<8x8xf32> to vector<1x1x8x8xf32>
    tpu.vector_store %arg9[%c0_35, %c1_36, %c0_37, %c0_38], %59 {strides = array<i32>} : memref<1x4x8x8xf32, #tpu.memory_space<vmem>>, vector<1x1x8x8xf32>,
    %60 = vector.extract_strided_slice %33 {offsets = [0, 16], sizes = [8, 8], strides = [1, 1]} : vector<8x32xf32> to vector<8x8xf32>
    %c0_39 = arith.constant 0 : index
    %c2 = arith.constant 2 : index
    %c0_40 = arith.constant 0 : index
    %c0_41 = arith.constant 0 : index
    %61 = vector.load %arg7[%c0_39, %c2, %c0_40, %c0_41] : memref<1x4x8x8xf32, #tpu.memory_space<vmem>>, vector<1x1x8x8xf32>
    %62 = vector.shape_cast %61 : vector<1x1x8x8xf32> to vector<8x8xf32>
    %63 = vector.shape_cast %60 : vector<8x8xf32> to vector<1x1x8x8xf32>
    tpu.vector_store %arg7[%c0_39, %c2, %c0_40, %c0_41], %63 {strides = array<i32>} : memref<1x4x8x8xf32, #tpu.memory_space<vmem>>, vector<1x1x8x8xf32>,
    %64 = vector.extract_strided_slice %34 {offsets = [0, 16], sizes = [8, 8], strides = [1, 1]} : vector<8x32xf32> to vector<8x8xf32>
    %c0_42 = arith.constant 0 : index
    %c2_43 = arith.constant 2 : index
    %c0_44 = arith.constant 0 : index
    %c0_45 = arith.constant 0 : index
    %65 = vector.load %arg8[%c0_42, %c2_43, %c0_44, %c0_45] : memref<1x4x8x8xf32, #tpu.memory_space<vmem>>, vector<1x1x8x8xf32>
    %66 = vector.shape_cast %65 : vector<1x1x8x8xf32> to vector<8x8xf32>
    %67 = vector.shape_cast %64 : vector<8x8xf32> to vector<1x1x8x8xf32>
    tpu.vector_store %arg8[%c0_42, %c2_43, %c0_44, %c0_45], %67 {strides = array<i32>} : memref<1x4x8x8xf32, #tpu.memory_space<vmem>>, vector<1x1x8x8xf32>,
    %68 = vector.extract_strided_slice %35 {offsets = [0, 16], sizes = [8, 8], strides = [1, 1]} : vector<8x32xf32> to vector<8x8xf32>
    %c0_46 = arith.constant 0 : index
    %c2_47 = arith.constant 2 : index
    %c0_48 = arith.constant 0 : index
    %c0_49 = arith.constant 0 : index
    %69 = vector.load %arg9[%c0_46, %c2_47, %c0_48, %c0_49] : memref<1x4x8x8xf32, #tpu.memory_space<vmem>>, vector<1x1x8x8xf32>
    %70 = vector.shape_cast %69 : vector<1x1x8x8xf32> to vector<8x8xf32>
    %71 = vector.shape_cast %68 : vector<8x8xf32> to vector<1x1x8x8xf32>
    tpu.vector_store %arg9[%c0_46, %c2_47, %c0_48, %c0_49], %71 {strides = array<i32>} : memref<1x4x8x8xf32, #tpu.memory_space<vmem>>, vector<1x1x8x8xf32>,
    %72 = vector.extract_strided_slice %33 {offsets = [0, 24], sizes = [8, 8], strides = [1, 1]} : vector<8x32xf32> to vector<8x8xf32>
    %c0_50 = arith.constant 0 : index
    %c3 = arith.constant 3 : index
    %c0_51 = arith.constant 0 : index
    %c0_52 = arith.constant 0 : index
    %73 = vector.load %arg7[%c0_50, %c3, %c0_51, %c0_52] : memref<1x4x8x8xf32, #tpu.memory_space<vmem>>, vector<1x1x8x8xf32>
    %74 = vector.shape_cast %73 : vector<1x1x8x8xf32> to vector<8x8xf32>
    %75 = vector.shape_cast %72 : vector<8x8xf32> to vector<1x1x8x8xf32>
    tpu.vector_store %arg7[%c0_50, %c3, %c0_51, %c0_52], %75 {strides = array<i32>} : memref<1x4x8x8xf32, #tpu.memory_space<vmem>>, vector<1x1x8x8xf32>,
    %76 = vector.extract_strided_slice %34 {offsets = [0, 24], sizes = [8, 8], strides = [1, 1]} : vector<8x32xf32> to vector<8x8xf32>
    %c0_53 = arith.constant 0 : index
    %c3_54 = arith.constant 3 : index
    %c0_55 = arith.constant 0 : index
    %c0_56 = arith.constant 0 : index
    %77 = vector.load %arg8[%c0_53, %c3_54, %c0_55, %c0_56] : memref<1x4x8x8xf32, #tpu.memory_space<vmem>>, vector<1x1x8x8xf32>
    %78 = vector.shape_cast %77 : vector<1x1x8x8xf32> to vector<8x8xf32>
    %79 = vector.shape_cast %76 : vector<8x8xf32> to vector<1x1x8x8xf32>
    tpu.vector_store %arg8[%c0_53, %c3_54, %c0_55, %c0_56], %79 {strides = array<i32>} : memref<1x4x8x8xf32, #tpu.memory_space<vmem>>, vector<1x1x8x8xf32>,
    %80 = vector.extract_strided_slice %35 {offsets = [0, 24], sizes = [8, 8], strides = [1, 1]} : vector<8x32xf32> to vector<8x8xf32>
    %c0_57 = arith.constant 0 : index
    %c3_58 = arith.constant 3 : index
    %c0_59 = arith.constant 0 : index
    %c0_60 = arith.constant 0 : index
    %81 = vector.load %arg9[%c0_57, %c3_58, %c0_59, %c0_60] : memref<1x4x8x8xf32, #tpu.memory_space<vmem>>, vector<1x1x8x8xf32>
    %82 = vector.shape_cast %81 : vector<1x1x8x8xf32> to vector<8x8xf32>
    %83 = vector.shape_cast %80 : vector<8x8xf32> to vector<1x1x8x8xf32>
    tpu.vector_store %arg9[%c0_57, %c3_58, %c0_59, %c0_60], %83 {strides = array<i32>} : memref<1x4x8x8xf32, #tpu.memory_space<vmem>>, vector<1x1x8x8xf32>,
    return
  }
  func.func @transform_0(%arg0: i32, %arg1: i32) -> (i32, i32, i32) {
    %c0_i32 = arith.constant 0 : i32
    %c0_i32_0 = arith.constant 0 : i32
    return %arg0, %arg1, %c0_i32 : i32, i32, i32
  }
  func.func @transform_1(%arg0: i32, %arg1: i32) -> (i32, i32) {
    %c0_i32 = arith.constant 0 : i32
    %c0_i32_0 = arith.constant 0 : i32
    %c0_i32_1 = arith.constant 0 : i32
    return %c0_i32, %c0_i32_0 : i32, i32
  }
  func.func @transform_2(%arg0: i32, %arg1: i32) -> (i32, i32) {
    %c0_i32 = arith.constant 0 : i32
    %c0_i32_0 = arith.constant 0 : i32
    %c0_i32_1 = arith.constant 0 : i32
    return %c0_i32, %c0_i32_0 : i32, i32
  }
  func.func @transform_3(%arg0: i32, %arg1: i32) -> (i32, i32) {
    %c0_i32 = arith.constant 0 : i32
    %c0_i32_0 = arith.constant 0 : i32
    %c0_i32_1 = arith.constant 0 : i32
    return %c0_i32, %c0_i32_0 : i32, i32
  }
  func.func @transform_4(%arg0: i32, %arg1: i32) -> (i32, i32) {
    %c0_i32 = arith.constant 0 : i32
    %c0_i32_0 = arith.constant 0 : i32
    %c0_i32_1 = arith.constant 0 : i32
    return %c0_i32, %c0_i32_0 : i32, i32
  }
  func.func @transform_5(%arg0: i32, %arg1: i32) -> (i32, i32, i32, i32) {
    %c0_i32 = arith.constant 0 : i32
    %c0_i32_0 = arith.constant 0 : i32
    %c0_i32_1 = arith.constant 0 : i32
    return %arg0, %c0_i32, %arg1, %c0_i32_0 : i32, i32, i32, i32
  }
  func.func @transform_6(%arg0: i32, %arg1: i32) -> (i32, i32, i32, i32) {
    %c0_i32 = arith.constant 0 : i32
    %c0_i32_0 = arith.constant 0 : i32
    %c0_i32_1 = arith.constant 0 : i32
    return %arg0, %c0_i32, %arg1, %c0_i32_0 : i32, i32, i32, i32
  }
  func.func @transform_7(%arg0: i32, %arg1: i32) -> (i32, i32, i32, i32) {
    %c0_i32 = arith.constant 0 : i32
    %c0_i32_0 = arith.constant 0 : i32
    %c0_i32_1 = arith.constant 0 : i32
    return %arg0, %c0_i32, %arg1, %c0_i32_0 : i32, i32, i32, i32
  }
}

</mosaic_0001>

<bundles_post_ra>
// kernel: tpu_custom_call.1
= control target key start
LH: loop header
LB: loop body
LE: loop exit
PB: predicated region body
PF: predicated region fallthrough
CT: control target
= control target key end

     0   :  { %7 = vsyncpa [#allocation3], 0  ;;  %s648_s0 = inlined_call_operand.hbm [shape: f32[8,128], index: 0, kind: input, shape index: {}]   ;;  %s649_s1 = inlined_call_operand.hbm [shape: f32[32,128], index: 1, kind: input, shape index: {}]   ;;  %s650_s2 = inlined_call_operand.hbm [shape: f32[32,128], index: 2, kind: output, shape index: {}]  }
   0x1   :  { %8 = vsyncpa [#allocation6], 0 }
   0x2   :  { %9 = vsyncpa [#allocation4], 0 }
   0x3   :  { %11 = vsyncpa [#allocation4 + $0x1], 0  ;;  %s459_s9 = smov 0   ;;  %s461_s10 = smov 0  }
   0x4   :  { %s463_s11 = smov 0   ;;  %s465_s12 = smov 0  }
   0x5 LB: > { %s480_s13 = sadd.s32 4294967295, %s439_s12   ;;  %s244_s14 = sadd.s32 4294967294, %s439_s12   ;;  %s439_s12 = sphi %s465_s12, %s673_s12   ;;  %s435_s11 = sphi %s463_s11, %s672_s11   ;;  %s431_s10 = sphi %s461_s10, %s671_s10   ;;  %s427_s9 = sphi %s459_s9, %s670_s9  }
   0x6   : > { %s484_s15 = sadd.s32 1, %s439_s12   ;;  %s45_s17 = sadd.s32 1, %s435_s11 }
   0x7   : > { %s42_s16 = ssub.s32 %s439_s12, %s484_s15  ;;  %p58_p1 = scmp.ne.s32.totalorder %s431_s10, %s427_s9 }
   0x8   : > { %p43_p0 = scmp.eq.s32.totalorder %s42_s16, 0  ;;  %p81_p2 = scmp.ne.s32.totalorder %s435_s11, %s431_s10 }
   0x9   : > { %p82_p3 = scmp.eq.s32.totalorder %s480_s13, 3  ;;  %p651_p4 = scmp.eq.s32.totalorder %s480_s13, 0 }
   0xa   : > { %s495_s18 = scalar_select %p43_p0, %s435_s11, %s45_s17  }
   0xb   : > { %p498_p5 = por %p82_p3, %p81_p2  ;;  %p88_p6 = scmp.eq.s32.totalorder %s244_s14, 3 }
   0xc   : > { %p245_p7 = scmp.ge.s32.totalorder %s439_s12, 1  ;;  %p95_p8 = scmp.lt.s32.totalorder %s439_s12, 5 }
   0xd   : > { %s657_s19 = scalar_select %p498_p5, 1, 0 }
   0xe   : > { %p507_p9 = por %p88_p6, %p58_p1  ;;  %p511_p10 = pnand %p245_p7, %p95_p8 }
   0xf   : > { %s441_s22 = smov [#allocation2]   ;;  %p520_p11 = por %p651_p4, %p58_p1 }
  0x10   : > { %s658_s20 = scalar_select %p507_p9, 1, 0 }
  0x11   : > { %s659_s21 = scalar_select %p511_p10, 1, 0 }
  0x12   : > { %s108_s23 = sshll.u32 %s441_s22, 4  ;;  %p263_p12 = pneg %p511_p10  ;;  %s109_s23 = int_to_ptr.vmem [resolvable:$true] %s108_s23 }
  0x13   : > { %s660_s24 = scalar_select %p520_p11, 1, 0 }
  0x14   : > { %s247_s25 = sshll.u32 %s480_s13, 7  ;;  %p529_p13 = pnand %p263_p12, %p651_p4 }
  0x15   : > { %s442_s27 = smov [#allocation5]   ;;  %s538_s3 = scalar_lea.hbm %s649_s1, %s247_s25 }
  0x16   : > { %s121_s28 = sshll.u32 %s442_s27, 4  ;;  %p542_p0 = pnand %p263_p12, %p520_p11  ;;  %s546_s28 = int_to_ptr.vmem [resolvable:$true] %s121_s28 }
  0x17   : > { %s311_s7 = scalar_lea.hbm %s648_s0, 128  ;;  %p313_p2 = pneg %p529_p13 }
  0x18   : > { %s662_s4 = scalar_select %p542_p0, 1, 0 }
  0x19   : > { %p312_p1 = scmp.ne.s32.totalorder %s648_s0, %s311_s7  ;;  %p318_p7 = scmp.lt.u32.totalorder %s311_s7, %s648_s0 }
  0x1b   : > { %p314_p3 = pnand %p313_p2, %p312_p1 }
  0x1d   : > { %p315_p6 = pneg %p314_p3 }
  0x1f   : > { %p320_p8 = pnand %p318_p7, %p315_p6 }
  0x21   : > { %323 = shalt.err (!%p320_p8)
}
  0x22   : > { %s324_s22 = scalar_lea.vmem %s109_s23, 128  ;;  %p332_p5 = scmp.lt.s32.totalorder %s109_s23, %s109_s23 }
  0x23   : > { %p325_p12 = scmp.ne.s32.totalorder %s109_s23, %s324_s22  ;;  %p333_p11 = scmp.lt.s32.totalorder %s324_s22, %s324_s22 }
  0x25   : > { %p327_p4 = pnand %p325_p12, %p313_p2  ;;  %p334_p10 = por %p333_p11, %p332_p5 }
  0x27   : > { %p328_p9 = pneg %p327_p4 }
  0x29   : > { %p335_p0 = pnand %p334_p10, %p328_p9 }
  0x2b   : > { %338 = shalt.err (!%p335_p0)
}
  0x2c   : > { %266 = dma.hbm_to_vmem [thread:$0]  (!%p529_p13), %s648_s0, 128, %s109_s23, [#allocation3]  }
  0x2d   : > { %s339_s30 = scalar_lea.hbm %s538_s3, 128  ;;  %p663_p4 = scmp.ne.s32.totalorder %s662_s4, 0 }
  0x2e   : > { %p340_p1 = scmp.ne.s32.totalorder %s538_s3, %s339_s30  ;;  %s344_s6 = scalar_lea.hbm %s649_s1, 512 }
  0x2f   : > { %p341_p2 = pneg %p663_p4  ;;  %p345_p10 = scmp.lt.u32.totalorder %s538_s3, %s649_s1 }
  0x30   : > { %p346_p11 = scmp.lt.u32.totalorder %s344_s6, %s339_s30  ;;  %p348_p3 = scmp.lt.u32.totalorder %s339_s30, %s538_s3 }
  0x31   : > { %p342_p5 = pnand %p341_p2, %p340_p1 }
  0x32   : > { %p347_p0 = por %p346_p11, %p345_p10 }
  0x33   : > { %p343_p9 = pneg %p342_p5 }
  0x34   : > { %p349_p13 = por %p348_p3, %p347_p0 }
  0x36   : > { %p350_p6 = pnand %p349_p13, %p343_p9 }
  0x38   : > { %353 = shalt.err (!%p350_p6)
}
  0x39   : > { %s354_s23 = scalar_lea.vmem %s546_s28, 128  ;;  %p362_p1 = scmp.lt.s32.totalorder %s546_s28, %s546_s28 }
  0x3a   : > { %p355_p7 = scmp.ne.s32.totalorder %s546_s28, %s354_s23  ;;  %p363_p5 = scmp.lt.s32.totalorder %s354_s23, %s354_s23 }
  0x3c   : > { %p357_p8 = pnand %p355_p7, %p341_p2  ;;  %p364_p10 = por %p363_p5, %p362_p1 }
  0x3e   : > { %p358_p12 = pneg %p357_p8 }
  0x40   : > { %p365_p11 = pnand %p364_p10, %p358_p12 }
  0x42   : > { %368 = shalt.err (!%p365_p11)
}
  0x43   : > { %269 = dma.hbm_to_vmem [thread:$0]  (!%p663_p4), %s538_s3, 128, %s546_s28, [#allocation6]  }
  0x44   : > { %p664_p9 = scmp.ne.s32.totalorder %s659_s21, 0 }
  0x45   : > { %p665_p0 = scmp.eq.s32.totalorder (!%p664_p9), %s480_s13, 0 }
  0x46   : > { %134 = sbr.rel (%p664_p9) target bundleno = 107 (0x6b), region = 28 }
  0x4d   : > { %414 = dma.done.wait (%p665_p0), [#allocation3], 128   ;;  %p666_p2 = pmov %p665_p0 }
  0x4e   : > { %p667_p3 = scmp.ne.s32.totalorder %s660_s24, 0 }
  0x4f   : > { %416 = vsyncadd (%p666_p2), [#allocation3], 4294967168 }
  0x50   : > { %418 = dma.done.wait (%p667_p3), [#allocation6], 128  }
  0x51   : > { %420 = vsyncadd (%p667_p3), [#allocation6], 4294967168  ;;  %s152_s4 = sand.u32 1, %s431_s10   ;;  %v155_v0 = vld [vmem:[#allocation5] sm:$0xff]  ;;  %v156_v1 = vld [vmem:[#allocation2] sm:$0xff]  ;;  %s606_s17 = scalar_lea.hbm %s650_s2, %s247_s25 }
  0x52   : > { %s250_s28 = sshll.u32 %s152_s4, 3  ;;  %v157_v2 = vadd.f32 %v156_v1, %v155_v0  ;;  %s160_s24 = scalar_lea.sflag [#allocation4], %s152_s4 }
  0x53   : > { %s154_s3 = scalar_lea.vmem [#allocation7], %s250_s28  ;;  %p668_p13 = scmp.ne.s32.totalorder %s657_s19, 0 }
  0x54   : > { %s173_s21 = sshll.u32 %s154_s3, 4  ;;  %158 = vst [vmem:[%s154_s3] sm:$0xff] %v157_v2  ;;  %s443_s27 = smov [#allocation7]   ;;  %s608_s21 = int_to_ptr.vmem [resolvable:$true] %s173_s21 }
  0x55   : > { %s369_s22 = scalar_lea.vmem %s608_s21, 128  ;;  %s373_s13 = sshll.u32 %s443_s27, 4  ;;  %s374_s13 = int_to_ptr.vmem [resolvable:$false] %s373_s13 }
  0x56   : > { %p370_p4 = scmp.ne.s32.totalorder %s608_s21, %s369_s22  ;;  %s375_s29 = scalar_lea.vmem %s374_s13, 256 }
  0x57   : > { %p376_p8 = scmp.lt.s32.totalorder %s608_s21, %s374_s13  ;;  %p377_p12 = scmp.lt.s32.totalorder %s375_s29, %s369_s22 }
  0x58   : > { %p371_p6 = pnand %p370_p4, %p668_p13 }
  0x59   : > { %p378_p1 = por %p377_p12, %p376_p8 }
  0x5a   : > { %p372_p7 = pneg %p371_p6 }
  0x5c   : > { %p379_p5 = pnand %p378_p1, %p372_p7 }
  0x5e   : > { %382 = shalt.err (!%p379_p5)
}
  0x5f   : > { %s383_s25 = scalar_lea.hbm %s606_s17, 128  ;;  %s387_s26 = scalar_lea.hbm %s650_s2, 512 }
  0x60   : > { %p384_p10 = scmp.ne.s32.totalorder %s606_s17, %s383_s25  ;;  %p388_p0 = scmp.lt.u32.totalorder %s606_s17, %s650_s2 }
  0x61   : > { %p389_p2 = scmp.lt.u32.totalorder %s387_s26, %s383_s25  ;;  %p391_p4 = scmp.lt.u32.totalorder %s383_s25, %s606_s17 }
  0x62   : > { %p385_p11 = pnand %p384_p10, %p668_p13 }
  0x63   : > { %p390_p3 = por %p389_p2, %p388_p0 }
  0x64   : > { %p386_p9 = pneg %p385_p11 }
  0x65   : > { %p392_p6 = por %p391_p4, %p390_p3 }
  0x67   : > { %p393_p7 = pnand %p392_p6, %p386_p9 }
  0x69   : > { %396 = shalt.err (!%p393_p7)
}
  0x6a   : > { %261 = dma.vmem_to_hbm [thread:$0]  (%p668_p13), %s608_s21, 128, %s606_s17, %s160_s24  }
  0x6b PF: > { %p276_p8 = scmp.ge.s32.totalorder %s439_s12, 2  ;;  %s185_s8 = sand.u32 1, %s427_s9  }
  0x6c   : > { %p669_p12 = scmp.ne.s32.totalorder %s658_s20, 0  ;;  %s186_s23 = scalar_lea.sflag [#allocation4], %s185_s8 }
  0x6e   : > { %p271_p1 = pnand %p276_p8, %p669_p12 }
  0x70   : > { %422 = dma.done.wait (!%p271_p1), %s186_s23, 128  }
  0x71   : > { %424 = vsyncadd (!%p271_p1), %s186_s23, 4294967168  ;;  %p14_p5 = scmp.ge.s32.totalorder %s484_s15, 6   ;;  %s670_s9 = smov %s431_s10 }
  0x72   : > { %s671_s10 = smov %s435_s11  ;;  %s672_s11 = smov %s495_s18 }
  0x73   : > { %s673_s12 = smov %s484_s15  ;;  %16 = sbr.rel (!%p14_p5) target bundleno = 5 (0x5), region = 70 }
  0x7a   :  { %191 = vsyncpa [#allocation3], 1 }
  0x7b   :  { %193 = vsyncpa [#allocation3 + $0x1], 1 }
  0x7c   :  { %194 = vsyncpa [#allocation6], 1 }
  0x7d   :  { %195 = vsyncpa [#allocation4], 1 }
  0x7e   :  { %197 = vsyncpa [#allocation4 + $0x1], 1 }

// kernel: tpu_custom_call.1
= control target key start
LH: loop header
LB: loop body
LE: loop exit
PB: predicated region body
PF: predicated region fallthrough
CT: control target
= control target key end

     0   :  { %s1448_s0 = inlined_call_operand.hbm [shape: f32[2,16,32], index: 0, kind: input, shape index: {}]   ;;  %s1449_s1 = inlined_call_operand.vmem [shape: f32[1,32], index: 1, kind: input, shape index: {}]   ;;  %s1450_s2 = inlined_call_operand.vmem [shape: f32[1,32], index: 2, kind: input, shape index: {}]   ;;  %s1451_s3 = inlined_call_operand.hbm [shape: f32[32,96], index: 3, kind: input, shape index: {}]   ;;  %s1452_s4 = inlined_call_operand.vmem [shape: f32[1,96], index: 4, kind: input, shape index: {}]   ;;  %s1453_s5 = inlined_call_operand.vmem [shape: f32[2,4,16,8], index: 5, kind: output, shape index: {0}]   ;;  %s1454_s6 = inlined_call_operand.vmem [shape: f32[2,4,16,8], index: 6, kind: output, shape index: {1}]   ;;  %s1455_s7 = inlined_call_operand.vmem [shape: f32[2,4,16,8], index: 7, kind: output, shape index: {2}]  }
   0x1   :  { %1461 = sst [smem:[#allocation13_spill]] %s1451_s3 }
   0x2   :  { %1462 = sst [smem:[#allocation14_spill]] %s1453_s5 }
   0x3   :  { %1463 = sst [smem:[#allocation15_spill]] %s1454_s6 }
   0x4   :  { %1464 = sst [smem:[#allocation16_spill]] %s1455_s7 }
   0x5   :  { %13 = vsyncpa [#allocation3], 0 }
   0x6   :  { %15 = vsyncpa [#allocation3 + $0x1], 0 }
   0x7   :  { %16 = vsyncpa [#allocation5], 0  ;;  %s1174_s24 = smov 0   ;;  %s1176_s25 = smov 0  }
   0x8   :  { %s1178_s26 = smov 0   ;;  %s1180_s27 = smov 0  }
   0x9   :  { %s1182_s28 = smov 0   ;;  %s1184_s29 = smov 0  }
   0xa   :  { %s1186_s30 = smov 0   ;;  %s1188_s8 = smov 0  }
   0xb LB: > { %1465 = sst [smem:[#allocation11_spill]] %s1098_s27  ;;  %s826_s9 = sadd.s32 4294967295, %s1114_s8   ;;  %s1114_s8 = sphi %s1188_s8, %s22_s8   ;;  %s1110_s30 = sphi %s1186_s30, %s1491_s30   ;;  %s1106_s29 = sphi %s1184_s29, %s1490_s29   ;;  %s1102_s28 = sphi %s1182_s28, %s1489_s28   ;;  %s1098_s27 = sphi %s1180_s27, %s1488_s27   ;;  %s1094_s26 = sphi %s1178_s26, %s1487_s26   ;;  %s1090_s25 = sphi %s1176_s25, %s1486_s25   ;;  %s1086_s24 = sphi %s1174_s24, %s1485_s24  }
   0xc   : > { %p56_p0 = scmp.ne.s32.totalorder %s1090_s25, %s1086_s24  ;;  %p1216_p1 = scmp.eq.s32.totalorder %s826_s9, 0 }
   0xd   : > { %p828_p2 = scmp.ge.s32.totalorder %s1114_s8, 1  ;;  %p235_p3 = scmp.lt.s32.totalorder %s1114_s8, 5 }
   0xe   : > { %s1466_s10 = scalar_select %p1216_p1, 1, 0 }
   0xf   : > { %p1224_p4 = por %p1216_p1, %p56_p0  ;;  %p1228_p5 = pnand %p828_p2, %p235_p3 }
  0x10   : > { %s1116_s13 = smov [#allocation4]   ;;  %s1470_s3 = sld [smem:[#allocation13_spill]] }
  0x11   : > { %s1467_s11 = scalar_select %p1224_p4, 1, 0 }
  0x12   : > { %s1468_s12 = scalar_select %p1228_p5, 1, 0 }
  0x13   : > { %s253_s14 = sshll.u32 %s1116_s13, 4  ;;  %p892_p6 = pneg %p1228_p5  ;;  %s254_s14 = int_to_ptr.vmem [resolvable:$true] %s253_s14 }
  0x15   : > { %p1236_p7 = pnand %p892_p6, %p1216_p1 }
  0x16   : > { %s986_s18 = scalar_lea.hbm %s1470_s3, 512 }
  0x17   : > { %p987_p8 = scmp.ne.s32.totalorder %s1470_s3, %s986_s18  ;;  %p988_p9 = pneg %p1236_p7 }
  0x18   : > { %p993_p12 = scmp.lt.u32.totalorder %s986_s18, %s1470_s3 }
  0x19   : > { %p989_p10 = pnand %p988_p9, %p987_p8 }
  0x1b   : > { %p990_p11 = pneg %p989_p10 }
  0x1d   : > { %p995_p13 = pnand %p993_p12, %p990_p11 }
  0x1f   : > { %998 = shalt.err (!%p995_p13)
}
  0x20   : > { %s999_s23 = scalar_lea.vmem %s254_s14, 512  ;;  %p1007_p6 = scmp.lt.s32.totalorder %s254_s14, %s254_s14 }
  0x21   : > { %p1000_p0 = scmp.ne.s32.totalorder %s254_s14, %s999_s23  ;;  %p1008_p1 = scmp.lt.s32.totalorder %s999_s23, %s999_s23 }
  0x23   : > { %p1002_p2 = pnand %p1000_p0, %p988_p9  ;;  %p1009_p4 = por %p1008_p1, %p1007_p6 }
  0x25   : > { %p1003_p3 = pneg %p1002_p2 }
  0x27   : > { %p1010_p5 = pnand %p1009_p4, %p1003_p3 }
  0x29   : > { %1013 = shalt.err (!%p1010_p5)
}
  0x2a   : > { %s1117_s24 = smov 128   ;;  %s1118_s13 = smov 8  }
  0x2b   : > { %895 = dma.hbm_to_vmem [thread:$0]  (!%p1236_p7), %s1470_s3, 512, %s254_s14, [#allocation5], %s1117_s24, %s1117_s24, %s1118_s13  }
  0x2c   : > { %p166_p1 = scmp.eq.s32.totalorder %s826_s9, 3  ;;  %s31_s18 = sadd.s32 1, %s1106_s29 }
  0x2d   : > { %p32_p4 = scmp.ge.s32.totalorder %s31_s18, 2  ;;  %s34_s19 = sadd.s32 1, %s1110_s30 }
  0x2e   : > { %p50_p5 = scmp.ne.s32.totalorder %s1094_s26, %s1090_s25  ;;  %p51_p8 = scmp.eq.s32.totalorder %s1114_s8, 0 }
  0x2f   : > { %s1493_s18 = smov (%p32_p4, %s31_s18), 0  ;;  %s1495_s19 = smov (!%p32_p4, %s34_s19), %s1110_s30 }
  0x30   : > { %1471 = sst [smem:[#allocation12_spill]] %s1493_s18  ;;  %s39_s15 = ssub.s32 %s1106_s29, %s1493_s18 }
  0x31   : > { %s43_s20 = sadd.s32 1, %s1094_s26  ;;  %p36_p9 = scmp.ge.s32.totalorder %s1495_s19, 2 }
  0x32   : > { %p1269_p7 = por %p166_p1, %p50_p5  ;;  %p1273_p10 = por %p51_p8, %p50_p5 }
  0x33   : > { %s270_s21 = sand.u32 1, %s1094_s26   ;;  %s1497_s19 = smov (%p36_p9, %s1495_s19), 0 }
  0x34   : > { %p901_p11 = scmp.lt.s32.totalorder %s1114_s8, 4  ;;  %s831_s22 = sshll.u32 %s270_s21, 3 }
  0x35   : > { %s38_s23 = ssub.s32 %s1110_s30, %s1497_s19  ;;  %s832_s13 = sshll.u32 %s1110_s30, 1 }
  0x36   : > { %s40_s24 = sor.u32 %s39_s15, %s38_s23  ;;  %s279_s16 = sadd.s32 %s1106_s29, %s832_s13 }
  0x37   : > { %p41_p12 = scmp.eq.s32.totalorder %s40_s24, 0  ;;  %s833_s17 = sshll.u32 %s279_s16, 7 }
  0x38   : > { %s274_s3 = scalar_lea.vmem [#allocation2], %s831_s22  ;;  %s1291_s27 = scalar_lea.hbm %s1448_s0, %s833_s17 }
  0x39   : > { %s283_s18 = sshll.u32 %s274_s3, 4  ;;  %p1299_p13 = pnand %p901_p11, %p1273_p10  ;;  %s1293_s18 = int_to_ptr.vmem [resolvable:$true] %s283_s18 }
  0x3a   : > { %s1286_s7 = scalar_select %p41_p12, %s1094_s26, %s43_s20  }
  0x3b   : > { %s271_s3 = scalar_lea.sflag [#allocation3], %s270_s21  ;;  %s1014_s20 = scalar_lea.hbm %s1291_s27, 128 }
  0x3c   : > { %p1015_p0 = scmp.ne.s32.totalorder %s1291_s27, %s1014_s20  ;;  %p1016_p2 = pneg %p1299_p13 }
  0x3d   : > { %s1019_s9 = scalar_lea.hbm %s1448_s0, 512  ;;  %p1020_p1 = scmp.lt.u32.totalorder %s1291_s27, %s1448_s0 }
  0x3e   : > { %p1017_p3 = pnand %p1016_p2, %p1015_p0  ;;  %p1021_p4 = scmp.lt.u32.totalorder %s1019_s9, %s1014_s20 }
  0x3f   : > { %p1023_p8 = scmp.lt.u32.totalorder %s1014_s20, %s1291_s27 }
  0x40   : > { %p1018_p6 = pneg %p1017_p3  ;;  %p1022_p5 = por %p1021_p4, %p1020_p1 }
  0x42   : > { %p1024_p9 = por %p1023_p8, %p1022_p5 }
  0x44   : > { %p1025_p10 = pnand %p1024_p9, %p1018_p6 }
  0x46   : > { %1028 = shalt.err (!%p1025_p10)
}
  0x47   : > { %s1029_s21 = scalar_lea.vmem %s1293_s18, 128  ;;  %s1119_s24 = smov [#allocation2]  }
  0x48   : > { %p1030_p11 = scmp.ne.s32.totalorder %s1293_s18, %s1029_s21  ;;  %s1034_s13 = sshll.u32 %s1119_s24, 4  ;;  %s1035_s13 = int_to_ptr.vmem [resolvable:$false] %s1034_s13 }
  0x49   : > { %s1036_s16 = scalar_lea.vmem %s1035_s13, 256  ;;  %p1037_p3 = scmp.lt.s32.totalorder %s1293_s18, %s1035_s13 }
  0x4a   : > { %p1032_p12 = pnand %p1030_p11, %p1016_p2  ;;  %p1038_p1 = scmp.lt.s32.totalorder %s1036_s16, %s1029_s21 }
  0x4c   : > { %p1033_p0 = pneg %p1032_p12  ;;  %p1039_p4 = por %p1038_p1, %p1037_p3 }
  0x4e   : > { %p1040_p5 = pnand %p1039_p4, %p1033_p0 }
  0x50   : > { %1043 = shalt.err (!%p1040_p5)
}
  0x51   : > { %899 = dma.hbm_to_vmem [thread:$0]  (!%p1299_p13), %s1291_s27, 128, %s1293_s18, %s271_s3  }
  0x52   : > { %p1475_p6 = scmp.ne.s32.totalorder %s1468_s12, 0 }
  0x53   : > { %s1331_s17 = sand.u32 (!%p1475_p6), 1, %s1090_s25   ;;  %p1476_p2 = scmp.ne.s32.totalorder (!%p1475_p6), %s1467_s11, 0 }
  0x54   : > { %292 = sbr.rel (%p1475_p6) target bundleno = 797 (0x31d), region = 40  ;;  %s835_s20 = sshll.u32 (!%p1475_p6), %s1331_s17, 3 }
  0x55   : > { %s295_s5 = scalar_lea.sflag (!%p1475_p6), [#allocation3], %s1331_s17  ;;  %s298_s6 = scalar_lea.vmem (!%p1475_p6), [#allocation2], %s835_s20 }
  0x5b   : > { %1077 = dma.done.wait (%p1476_p2), %s295_s5, 128  }
  0x5c   : > { %1079 = vsyncadd (%p1476_p2), %s295_s5, 4294967168  ;;  %p1477_p8 = scmp.ne.s32.totalorder %s1466_s10, 0 }
  0x5e   : > { %1081 = dma.done.wait (%p1477_p8), [#allocation5], 512  }
  0x5f   : > { %1083 = vsyncadd (%p1477_p8), [#allocation5], 4294966784  ;;  %vm343_vm0 = vcmask 261120   ;;  %v340_v0 = vld [vmem:[%s298_s6] sm:$0xff]  ;;  %v372_v7 = vld [vmem:[#allocation4] sm:$0xff]  ;;  %v1120_v10 = vmov 0.0|0.0  }
  0x60   : > { %v344_v1 = vsel %vm343_vm0, %v340_v0, 0.0  ;;  %v373_v8 = vld [vmem:[#allocation4 + $0x8] sm:$0xff]  ;;  %v374_v9 = vld [vmem:[#allocation4 + $0x10] sm:$0xff]  ;;  %880 = vmatprep.subr.bf16.mxu0 %v1120_v10  ;;  %v375_v12 = vld [vmem:[#allocation4 + $0x18] sm:$0xff]  ;;  %vm1121_vm1 = vmmov 0   ;;  %v1122_v13 = vmov 0.0  }
  0x61   : > { %345 = vadd.xlane.f32.xlu0 %v344_v1  ;;  %v881_v11 = vpack.c.bf16 %v373_v8, %v372_v7  ;;  %877 = vmatprep.mubr.msk.f32.mxu0 %vm1121_vm1, %v1122_v13  ;;  %v884_v14 = vpack.c.bf16 %v375_v12, %v374_v9  ;;  %v840_v19 = vld [vmem:[%s1449_s1] ss:$0 sm:$0xff]  ;;  %s1356_s3 = sshll.u32 %s1331_s17, 5  ;;  %vm457_vm2 = vcmask 64512   ;;  %s1123_s9 = smov 96  }
  0x62   : > { %v841_v21 = vld [vmem:[%s1450_s2] ss:$0 sm:$0xff]  ;;  %s1124_s22 = smov 120   ;;  %s1359_s23 = scalar_lea.vmem [#allocation6], %s1356_s3 }
  0x63   : > { %882 = vmatpush3.bf16.msra.mxu0 %v881_v11  ;;  %v842_v24 = vld [vmem:[%s1452_s4] ss:$0 sm:$0xff]  ;;  %s1125_s21 = smov 64   ;;  %s1126_s24 = smov 72  }
  0x64   : > { %883 = vmatprep.subr.bf16.mxu0 %v1120_v10  ;;  %s1127_s13 = smov 88   ;;  %s1128_s16 = smov 56  }
  0x65   : > { %s1129_s17 = smov 80   ;;  %s1130_s20 = smov 48  }
  0x66   : > { %s1131_s5 = smov 112   ;;  %s1132_s6 = smov 104  }
  0x67   : > { %885 = vmatpush3.bf16.msra.mxu0 %v884_v14  ;;  %s1133_s27 = smov 40   ;;  %s1364_s10 = scalar_lea.vmem [#allocation7], %s1356_s3 }
  0x68   : > { %s1371_s11 = scalar_lea.vmem [#allocation8], %s1356_s3  ;;  %s1478_s12 = sld [smem:[#allocation11_spill]] (%p1269_p7) }
  0x69   : > { %s856_s18 = sshll.u32 (%p1269_p7), %s1102_s28, 3 }
  0x6e   : > { %s530_s15 = sadd.s32 (%p1269_p7), %s1478_s12, %s856_s18 }
  0x6f   : > { %s857_s3 = sshll.u32 (%p1269_p7), %s530_s15, 3 }
  0xee   : > { %v346_v2 = vpop.xlane.xlu0 %345 }
  0xef   : > { %v348_v3 = vmul.f32 0.03125, %v346_v2 }
  0xf1   : > { %v349_v4 = vsub.f32 %v340_v0, %v348_v3 }
  0xf3   : > { %v350_v5 = vmul.f32 %v349_v4, %v349_v4 }
  0xf5   : > { %v351_v6 = vsel %vm343_vm0, %v350_v5, 0.0 }
  0xf6   : > { %352 = vadd.xlane.f32.xlu0 %v351_v6 }
 0x183   : > { %v353_v15 = vpop.xlane.xlu0 %352 }
 0x184   : > { %v354_v16 = vmul.f32 0.03125, %v353_v15 }
 0x186   : > { %v355_v17 = vadd.f32 1e-05, %v354_v16 }
 0x188   : > { %984 = vrsqrt.f32 %v355_v17 }
 0x192   : > { %v985_v18 = vpop.eup %984 }
 0x193   : > { %v357_v20 = vmul.f32 %v985_v18, %v349_v4 }
 0x195   : > { %v364_v22 = vmul.f32 %v840_v19, %v357_v20 }
 0x197   : > { %v371_v23 = vadd.f32 %v841_v21, %v364_v22 }
 0x199   : > { %878 = vmatmul.mubr.msk.f32.vlgmr.msra.gmra.mrb[0].mxu0 %vm343_vm0, %v371_v23 }
 0x26c   : > { %v452_v25 = vpop.f32.mrb[0].mxu0 }
 0x26d   : > { %v453_v26 = vadd.f32 %v842_v24, %v452_v25  ;;  %v879_v27 = vpop.f32.mrb[1].mxu0 }
 0x26f   : > { %460 = vrot.lane.b32.xlu1 %v453_v26, %s1123_s9  ;;  %v456_v28 = vmul.f32 0.35355338, %v453_v26 }
 0x271   : > { %469 = vrot.lane.b32.xlu0 %v456_v28, %s1124_s22  ;;  %458 = vst.msk [vmem:[%s1359_s23] sm:$0xff] %vm457_vm2, %v456_v28 }
 0x273   : > { %464 = vrot.lane.b32.xlu1 %v453_v26, %s1125_s21  ;;  %s1479_s21 = sld [smem:[#allocation14_spill]] (%p1269_p7) }
 0x275   : > { %504 = vrot.lane.b32.xlu0 %v453_v26, %s1126_s24 }
 0x277   : > { %474 = vrot.lane.b32.xlu1 %v453_v26, %s1127_s13 }
 0x278   : > { %v566_v40 = vld [vmem:[%s1359_s23] sm:$0xff] (%p1269_p7) }
 0x279   : > { %s532_s24 = scalar_lea.vmem (%p1269_p7), %s1479_s21, %s857_s3 }
 0x27a   : > { %567 = vst [vmem:[%s532_s24] sm:$0xff] (%p1269_p7), %v566_v40 }
 0x27b   : > { %479 = vrot.lane.b32.xlu1 %v453_v26, %s1128_s16 }
 0x27f   : > { %489 = vrot.lane.b32.xlu1 %v453_v26, %s1129_s17 }
 0x283   : > { %494 = vrot.lane.b32.xlu1 %v453_v26, %s1130_s20 }
 0x287   : > { %484 = vrot.lane.b32.xlu1 %v456_v28, %s1131_s5 }
 0x28b   : > { %499 = vrot.lane.b32.xlu1 %v456_v28, %s1132_s6 }
 0x28f   : > { %509 = vrot.lane.b32.xlu1 %v453_v26, %s1133_s27 }
 0x2e1   : > { %v461_v29 = vpop.permute.xlu1 %460 }
 0x2e2   : > { %463 = vst.msk [vmem:[%s1364_s10] sm:$0xff] %vm457_vm2, %v461_v29 }
 0x2e3   : > { %v470_v30 = vpop.permute.xlu0 %469 }
 0x2e4   : > { %844 = vst.msk [vmem:[%s1359_s23 + $0x8] sm:$0xff] %vm457_vm2, %v470_v30 }
 0x2e5   : > { %v465_v31 = vpop.permute.xlu1 %464 }
 0x2e6   : > { %467 = vst.msk [vmem:[%s1371_s11] sm:$0xff] %vm457_vm2, %v465_v31 }
 0x2e7   : > { %v505_v32 = vpop.permute.xlu0 %504 }
 0x2e8   : > { %851 = vst.msk [vmem:[%s1364_s10 + $0x18] sm:$0xff] %vm457_vm2, %v505_v32 }
 0x2e9   : > { %v475_v33 = vpop.permute.xlu1 %474 }
 0x2ea   : > { %845 = vst.msk [vmem:[%s1364_s10 + $0x8] sm:$0xff] %vm457_vm2, %v475_v33 }
 0x2eb   : > { %v568_v41 = vld [vmem:[%s1359_s23 + $0x8] sm:$0xff] (%p1269_p7) }
 0x2ec   : > { %569 = vst [vmem:[%s532_s24 + $0x10] sm:$0xff] (%p1269_p7), %v568_v41 }
 0x2ed   : > { %v480_v34 = vpop.permute.xlu1 %479 }
 0x2ee   : > { %846 = vst.msk [vmem:[%s1371_s11 + $0x8] sm:$0xff] %vm457_vm2, %v480_v34 }
 0x2f1   : > { %v490_v35 = vpop.permute.xlu1 %489 }
 0x2f2   : > { %848 = vst.msk [vmem:[%s1364_s10 + $0x10] sm:$0xff] %vm457_vm2, %v490_v35 }
 0x2f5   : > { %v495_v36 = vpop.permute.xlu1 %494 }
 0x2f6   : > { %849 = vst.msk [vmem:[%s1371_s11 + $0x10] sm:$0xff] %vm457_vm2, %v495_v36 }
 0x2f9   : > { %v485_v37 = vpop.permute.xlu1 %484 }
 0x2fa   : > { %847 = vst.msk [vmem:[%s1359_s23 + $0x10] sm:$0xff] %vm457_vm2, %v485_v37 }
 0x2fc   : > { %528 = sbr.rel (!%p1269_p7) target bundleno = 775 (0x307), region = 52 }
 0x2fd   : > { %v500_v38 = vpop.permute.xlu1 %499 }
 0x2fe   : > { %850 = vst.msk [vmem:[%s1359_s23 + $0x18] sm:$0xff] %vm457_vm2, %v500_v38 }
 0x301   : > { %v510_v39 = vpop.permute.xlu1 %509  ;;  %v570_v42 = vld [vmem:[%s1359_s23 + $0x10] sm:$0xff] (%p1269_p7) }
 0x302   : > { %852 = vst.msk [vmem:[%s1371_s11 + $0x18] sm:$0xff] %vm457_vm2, %v510_v39  ;;  %571 = vst [vmem:[%s532_s24 + $0x20] sm:$0xff] (%p1269_p7), %v570_v42 }
 0x305   : > { %v572_v43 = vld [vmem:[%s1359_s23 + $0x18] sm:$0xff] }
 0x306   : > { %573 = vst [vmem:[%s532_s24 + $0x30] sm:$0xff] %v572_v43 }
 0x307 PF: > { %579 = sbr.rel (!%p1269_p7) target bundleno = 786 (0x312), region = 90  ;;  %s1480_s13 = sld [smem:[#allocation11_spill]] (%p1269_p7)  ;;  %v617_v44 = vld [vmem:[%s1364_s10] sm:$0xff] (%p1269_p7)  ;;  %v619_v45 = vld [vmem:[%s1364_s10 + $0x8] sm:$0xff] (%p1269_p7)  ;;  %v621_v46 = vld [vmem:[%s1364_s10 + $0x10] sm:$0xff] (%p1269_p7) }
 0x308   : > { %s858_s23 = sshll.u32 (%p1269_p7), %s1102_s28, 3  ;;  %v623_v47 = vld [vmem:[%s1364_s10 + $0x18] sm:$0xff] (%p1269_p7)  ;;  %s1481_s6 = sld [smem:[#allocation15_spill]] (%p1269_p7) }
 0x30d   : > { %s581_s16 = sadd.s32 (%p1269_p7), %s1480_s13, %s858_s23 }
 0x30e   : > { %s859_s17 = sshll.u32 %s581_s16, 3 }
 0x30f   : > { %s583_s27 = scalar_lea.vmem %s1481_s6, %s859_s17 }
 0x310   : > { %618 = vst [vmem:[%s583_s27] sm:$0xff] %v617_v44  ;;  %620 = vst [vmem:[%s583_s27 + $0x10] sm:$0xff] %v619_v45 }
 0x311   : > { %622 = vst [vmem:[%s583_s27 + $0x20] sm:$0xff] %v621_v46  ;;  %624 = vst [vmem:[%s583_s27 + $0x30] sm:$0xff] %v623_v47 }
 0x312 PF: > { %630 = sbr.rel (!%p1269_p7) target bundleno = 797 (0x31d), region = 128  ;;  %s1482_s12 = sld [smem:[#allocation11_spill]] (%p1269_p7)  ;;  %v668_v48 = vld [vmem:[%s1371_s11] sm:$0xff] (%p1269_p7)  ;;  %v670_v49 = vld [vmem:[%s1371_s11 + $0x8] sm:$0xff] (%p1269_p7)  ;;  %v672_v50 = vld [vmem:[%s1371_s11 + $0x10] sm:$0xff] (%p1269_p7) }
 0x313   : > { %s860_s10 = sshll.u32 (%p1269_p7), %s1102_s28, 3  ;;  %v674_v51 = vld [vmem:[%s1371_s11 + $0x18] sm:$0xff] (%p1269_p7)  ;;  %s1483_s22 = sld [smem:[#allocation16_spill]] (%p1269_p7) }
 0x318   : > { %s632_s18 = sadd.s32 (%p1269_p7), %s1482_s12, %s860_s10 }
 0x319   : > { %s861_s15 = sshll.u32 %s632_s18, 3 }
 0x31a   : > { %s634_s21 = scalar_lea.vmem %s1483_s22, %s861_s15 }
 0x31b   : > { %669 = vst [vmem:[%s634_s21] sm:$0xff] %v668_v48  ;;  %671 = vst [vmem:[%s634_s21 + $0x10] sm:$0xff] %v670_v49 }
 0x31c   : > { %673 = vst [vmem:[%s634_s21 + $0x20] sm:$0xff] %v672_v50  ;;  %675 = vst [vmem:[%s634_s21 + $0x30] sm:$0xff] %v674_v51 }
 0x31d PF: > { %s22_s8 = sadd.s32 1, %s1114_s8   ;;  %s1484_s14 = sld [smem:[#allocation12_spill]] }
 0x31e   : > { %p19_p7 = scmp.ge.s32.totalorder %s22_s8, 6   ;;  %s1485_s24 = smov %s1090_s25 }
 0x31f   : > { %s1486_s25 = smov %s1094_s26  ;;  %s1487_s26 = smov %s1286_s7 }
 0x320   : > { %s1488_s27 = smov %s1106_s29  ;;  %s1489_s28 = smov %s1110_s30 }
 0x321   : > { %s1491_s30 = smov %s1497_s19  ;;  %21 = sbr.rel (!%p19_p7) target bundleno = 11 (0xb), region = 231 }
 0x323   : > { %s1490_s29 = smov %s1484_s14 }
 0x328   :  { %705 = vsyncpa [#allocation3], 1 }
 0x329   :  { %707 = vsyncpa [#allocation3 + $0x1], 1 }
 0x32a   :  { %708 = vsyncpa [#allocation5], 1 }

</bundles_post_ra>
